<compile_context>
chip_gen: v7x
topology: tpu7x:2x2x1
jax: 0.10.0
libtpu: 0.0.40
codegen_flags: <defaults>
</compile_context>

<pallas_src>
import functools

import jax
import jax.numpy as jnp
from jax.experimental import pallas as pl
from jax.experimental.pallas import tpu as pltpu


_MAX_BLOCK_BYTES = 2 * 1024 * 1024  # per-input block; x2 inputs x2 buffers ~ 8 MiB


def _choose_row_tile(nc):
    # Second-to-last block dim must be a multiple of 8 or the full extent.
    return 8 if (nc >= 8 and nc % 8 == 0) else nc


def _choose_spatial_tile(hw, rows, itemsize):
    # Last block dim must be a multiple of 128 or the full extent.
    if hw % 128 != 0:
        return hw  # full-extent fallback for shapes that can't be lane-tiled
    max_elems = max(128, _MAX_BLOCK_BYTES // max(1, rows * itemsize))
    best = 128
    t = 128
    limit = min(hw, max_elems)
    while t <= limit:
        if hw % t == 0:
            best = t
        t += 128
    return best


def _dice_partial_kernel(x_ref, t_ref, inter_ref, sum_ref, *, apply_sigmoid):
    # x_ref / t_ref:      (R, T) tile of the flattened (N*C, H*W) arrays.
    # inter_ref/sum_ref:  (R, 1) per-row accumulators, resident across the
    #                     spatial (k) reduction axis.
    k = pl.program_id(1)

    @pl.when(k == 0)
    def _():
        inter_ref[...] = jnp.zeros_like(inter_ref)
        sum_ref[...] = jnp.zeros_like(sum_ref)

    x = x_ref[...].astype(jnp.float32)
    t = t_ref[...].astype(jnp.float32)
    if apply_sigmoid:
        x = jax.nn.sigmoid(x)

    inter_ref[...] += jnp.sum(x * t, axis=-1, keepdims=True)
    sum_ref[...] += jnp.sum(x + t, axis=-1, keepdims=True)


def mean_dice_score(inputs, targets, weights=None, sigmoid=True, epsilon=1e-5):
    """Equivalent of MeanDiceScore.forward (PyTorch) on NCHW inputs."""
    N, C, H, W = inputs.shape
    NC, HW = N * C, H * W

    x2 = inputs.reshape(NC, HW)
    t2 = targets.reshape(NC, HW)

    R = _choose_row_tile(NC)
    itemsize = max(jnp.dtype(inputs.dtype).itemsize,
                   jnp.dtype(targets.dtype).itemsize)
    T = _choose_spatial_tile(HW, R, itemsize)
    n_rows = NC // R
    n_k = HW // T

    kernel = functools.partial(_dice_partial_kernel, apply_sigmoid=sigmoid)

    out_shapes = (
        jax.ShapeDtypeStruct((NC, 1), jnp.float32),  # per-(n,c) intersection
        jax.ShapeDtypeStruct((NC, 1), jnp.float32),  # per-(n,c) sum
    )

    inter, summ = pl.pallas_call(
        kernel,
        out_shape=out_shapes,
        grid_spec=pltpu.PrefetchScalarGridSpec(
            num_scalar_prefetch=0,
            grid=(n_rows, n_k),
            in_specs=[
                pl.BlockSpec((R, T), lambda i, k: (i, k)),
                pl.BlockSpec((R, T), lambda i, k: (i, k)),
            ],
            out_specs=[
                pl.BlockSpec((R, 1), lambda i, k: (i, 0)),
                pl.BlockSpec((R, 1), lambda i, k: (i, 0)),
            ],
        ),
        compiler_params=pltpu.CompilerParams(
            dimension_semantics=("parallel", "arbitrary"),
            vmem_limit_bytes=32 * 1024 * 1024,
        ),
    )(x2, t2)

    # Apply per-channel weights on the (N, C) partial sums (distributes over
    # the per-element weighting of the reference), then the tiny final ratio.
    if weights is None:
        weights = jnp.ones((C,), dtype=jnp.float32)
    w = weights.astype(jnp.float32)

    inter_nc = inter.reshape(N, C)
    sum_nc = summ.reshape(N, C)
    num = 2.0 * jnp.sum(inter_nc * w[None, :], axis=1)
    den = jnp.sum(sum_nc * w[None, :], axis=1) + jnp.float32(epsilon)
    return jnp.mean(num / den)


def _reference(inputs, targets, weights=None, sigmoid=True, epsilon=1e-5):
    if sigmoid:
        inputs = jax.nn.sigmoid(inputs)
    if weights is None:
        weights = jnp.ones((inputs.shape[1],), dtype=jnp.float32)
    w = weights[None, :, None, None]
    num = 2.0 * jnp.sum(inputs * targets * w, axis=(1, 2, 3))
    den = jnp.sum((inputs + targets) * w, axis=(1, 2, 3)) + epsilon
    return jnp.mean(num / den)


if __name__ == "__main__":
    key = jax.random.PRNGKey(0)
    k1, k2 = jax.random.split(key)

    N, C, H, W = 2, 4, 16, 16
    inputs = jax.random.normal(k1, (N, C, H, W), dtype=jnp.float32)     # logits
    targets = (jax.random.uniform(k2, (N, C, H, W)) > 0.5).astype(jnp.float32)

    out = mean_dice_score(inputs, targets)
    out = jax.block_until_ready(out)

    ref = jax.block_until_ready(_reference(inputs, targets))
    assert jnp.allclose(out, ref, rtol=1e-5, atol=1e-6), (out, ref)

    print("KERNEL_OK")
</pallas_src>

<mosaic_0001>
module attributes {stable_mosaic.version = 11 : i64} {
  func.func @_dice_partial_kernel(%arg0: i32, %arg1: i32, %arg2: memref<8x256xf32, #tpu.memory_space<vmem>>, %arg3: memref<8x256xf32, #tpu.memory_space<vmem>>, %arg4: memref<8x1xf32, #tpu.memory_space<vmem>>, %arg5: memref<8x1xf32, #tpu.memory_space<vmem>>) attributes {dimension_semantics = [#tpu.dimension_semantics<parallel>, #tpu.dimension_semantics<arbitrary>], iteration_bounds = array<i64: 1, 1>, scalar_prefetch = 0 : i64, scratch_operands = 0 : i64, tpu.core_type = #tpu.core_type<tc>, window_params = [{transform_indices = @transform_0, window_bounds = array<i64: 8, 256>}, {transform_indices = @transform_1, window_bounds = array<i64: 8, 256>}, {transform_indices = @transform_2, window_bounds = array<i64: 8, 1>}, {transform_indices = @transform_3, window_bounds = array<i64: 8, 1>}]} {
    %c0_i32 = arith.constant 0 : i32
    %0 = arith.cmpi eq, %arg1, %c0_i32 : i32
    %1 = arith.extui %0 : i1 to i32
    %c0_i32_0 = arith.constant 0 : i32
    %2 = arith.cmpi ne, %1, %c0_i32_0 : i32
    scf.if %2 {
      %cst_14 = arith.constant 0.000000e+00 : f32
      %22 = vector.broadcast %cst_14 : f32 to vector<8x1xf32>
      %c0_15 = arith.constant 0 : index
      %c0_16 = arith.constant 0 : index
      %23 = vector.load %arg4[%c0_15, %c0_16] : memref<8x1xf32, #tpu.memory_space<vmem>>, vector<8x1xf32>
      tpu.vector_store %arg4[%c0_15, %c0_16], %22 {strides = array<i32>} : memref<8x1xf32, #tpu.memory_space<vmem>>, vector<8x1xf32>,
      %cst_17 = arith.constant 0.000000e+00 : f32
      %24 = vector.broadcast %cst_17 : f32 to vector<8x1xf32>
      %c0_18 = arith.constant 0 : index
      %c0_19 = arith.constant 0 : index
      %25 = vector.load %arg5[%c0_18, %c0_19] : memref<8x1xf32, #tpu.memory_space<vmem>>, vector<8x1xf32>
      tpu.vector_store %arg5[%c0_18, %c0_19], %24 {strides = array<i32>} : memref<8x1xf32, #tpu.memory_space<vmem>>, vector<8x1xf32>,
    } else {
    }
    %c0 = arith.constant 0 : index
    %c0_1 = arith.constant 0 : index
    %3 = vector.load %arg2[%c0, %c0_1] : memref<8x256xf32, #tpu.memory_space<vmem>>, vector<8x256xf32>
    %c0_2 = arith.constant 0 : index
    %c0_3 = arith.constant 0 : index
    %4 = vector.load %arg3[%c0_2, %c0_3] : memref<8x256xf32, #tpu.memory_space<vmem>>, vector<8x256xf32>
    %5 = arith.negf %3 : vector<8x256xf32>
    %6 = math.exp %5 : vector<8x256xf32>
    %cst = arith.constant 1.000000e+00 : f32
    %7 = vector.broadcast %cst : f32 to vector<8x256xf32>
    %8 = arith.addf %7, %6 : vector<8x256xf32>
    %9 = arith.divf %7, %8 : vector<8x256xf32>
    %c0_4 = arith.constant 0 : index
    %c0_5 = arith.constant 0 : index
    %10 = vector.load %arg4[%c0_4, %c0_5] : memref<8x1xf32, #tpu.memory_space<vmem>>, vector<8x1xf32>
    %11 = arith.mulf %9, %4 : vector<8x256xf32>
    %cst_6 = arith.constant dense<0.000000e+00> : vector<8xf32>
    %12 = vector.multi_reduction <add>, %11, %cst_6 [1] : vector<8x256xf32> to vector<8xf32>
    %13 = vector.shape_cast %12 : vector<8xf32> to vector<8x1xf32>
    %14 = arith.addf %10, %13 : vector<8x1xf32>
    %c0_7 = arith.constant 0 : index
    %c0_8 = arith.constant 0 : index
    %15 = vector.load %arg4[%c0_7, %c0_8] : memref<8x1xf32, #tpu.memory_space<vmem>>, vector<8x1xf32>
    tpu.vector_store %arg4[%c0_7, %c0_8], %14 {strides = array<i32>} : memref<8x1xf32, #tpu.memory_space<vmem>>, vector<8x1xf32>,
    %c0_9 = arith.constant 0 : index
    %c0_10 = arith.constant 0 : index
    %16 = vector.load %arg5[%c0_9, %c0_10] : memref<8x1xf32, #tpu.memory_space<vmem>>, vector<8x1xf32>
    %17 = arith.addf %9, %4 : vector<8x256xf32>
    %cst_11 = arith.constant dense<0.000000e+00> : vector<8xf32>
    %18 = vector.multi_reduction <add>, %17, %cst_11 [1] : vector<8x256xf32> to vector<8xf32>
    %19 = vector.shape_cast %18 : vector<8xf32> to vector<8x1xf32>
    %20 = arith.addf %16, %19 : vector<8x1xf32>
    %c0_12 = arith.constant 0 : index
    %c0_13 = arith.constant 0 : index
    %21 = vector.load %arg5[%c0_12, %c0_13] : memref<8x1xf32, #tpu.memory_space<vmem>>, vector<8x1xf32>
    tpu.vector_store %arg5[%c0_12, %c0_13], %20 {strides = array<i32>} : memref<8x1xf32, #tpu.memory_space<vmem>>, vector<8x1xf32>,
    return
  }
  func.func @transform_0(%arg0: i32, %arg1: i32) -> (i32, i32) {
    %c0_i32 = arith.constant 0 : i32
    return %arg0, %arg1 : i32, i32
  }
  func.func @transform_1(%arg0: i32, %arg1: i32) -> (i32, i32) {
    %c0_i32 = arith.constant 0 : i32
    return %arg0, %arg1 : i32, i32
  }
  func.func @transform_2(%arg0: i32, %arg1: i32) -> (i32, i32) {
    %c0_i32 = arith.constant 0 : i32
    %c0_i32_0 = arith.constant 0 : i32
    return %arg0, %c0_i32 : i32, i32
  }
  func.func @transform_3(%arg0: i32, %arg1: i32) -> (i32, i32) {
    %c0_i32 = arith.constant 0 : i32
    %c0_i32_0 = arith.constant 0 : i32
    return %arg0, %c0_i32 : i32, i32
  }
}

</mosaic_0001>

<bundles_post_ra>
// kernel: tpu_custom_call.1
= control target key start
LH: loop header
LB: loop body
LE: loop exit
PB: predicated region body
PF: predicated region fallthrough
CT: control target
= control target key end

     0   :  { %9 = vsyncpa [#allocation3], 0  ;;  %s217_s0 = inlined_call_operand.hbm [shape: f32[8,256], index: 0, kind: input, shape index: {}]   ;;  %s218_s1 = inlined_call_operand.hbm [shape: f32[8,256], index: 1, kind: input, shape index: {}]   ;;  %s219_s2 = inlined_call_operand.vmem [shape: f32[8,1], index: 2, kind: output, shape index: {0}]   ;;  %s220_s3 = inlined_call_operand.vmem [shape: f32[8,1], index: 3, kind: output, shape index: {1}]  }
   0x1   :  { %10 = vsyncpa [#allocation5], 0  ;;  %s148_s12 = smov [#allocation2]   ;;  %s149_s14 = smov [#allocation4]  }
   0x2   :  { %s17_s13 = sshll.u32 %s148_s12, 4  ;;  %s27_s15 = sshll.u32 %s149_s14, 4  ;;  %s18_s13 = int_to_ptr.vmem [resolvable:$true] %s17_s13  ;;  %s28_s15 = int_to_ptr.vmem [resolvable:$true] %s27_s15 }
   0x3   :  { %s100_s18 = scalar_lea.hbm %s217_s0, 256 }
   0x4   :  { %p101_p0 = scmp.ne.s32.totalorder %s217_s0, %s100_s18  ;;  %p104_p1 = scmp.lt.u32.totalorder %s100_s18, %s217_s0 }
   0x6   :  { %p106_p2 = pnand %p104_p1, %p101_p0 }
   0x8   :  { %109 = shalt.err (!%p106_p2)
}
   0x9   :  { %s110_s23 = scalar_lea.vmem %s18_s13, 256  ;;  %p115_p4 = scmp.lt.s32.totalorder %s18_s13, %s18_s13 }
   0xa   :  { %p111_p3 = scmp.ne.s32.totalorder %s18_s13, %s110_s23  ;;  %p116_p5 = scmp.lt.s32.totalorder %s110_s23, %s110_s23 }
   0xc   :  { %p117_p6 = por %p116_p5, %p115_p4 }
   0xe   :  { %p118_p7 = pnand %p117_p6, %p111_p3 }
  0x10   :  { %121 = shalt.err (!%p118_p7)
}
  0x11   :  { %20 = dma.hbm_to_vmem [thread:$0]  %s217_s0, 256, %s18_s13, [#allocation3]  }
  0x12   :  { %s122_s28 = scalar_lea.hbm %s218_s1, 256 }
  0x13   :  { %p123_p8 = scmp.ne.s32.totalorder %s218_s1, %s122_s28  ;;  %p126_p9 = scmp.lt.u32.totalorder %s122_s28, %s218_s1 }
  0x15   :  { %p128_p10 = pnand %p126_p9, %p123_p8 }
  0x17   :  { %131 = shalt.err (!%p128_p10)
}
  0x18   :  { %s132_s6 = scalar_lea.vmem %s28_s15, 256  ;;  %p137_p12 = scmp.lt.s32.totalorder %s28_s15, %s28_s15 }
  0x19   :  { %p133_p11 = scmp.ne.s32.totalorder %s28_s15, %s132_s6  ;;  %p138_p13 = scmp.lt.s32.totalorder %s132_s6, %s132_s6 }
  0x1b   :  { %p139_p0 = por %p138_p13, %p137_p12 }
  0x1d   :  { %p140_p1 = pnand %p139_p0, %p133_p11 }
  0x1f   :  { %143 = shalt.err (!%p140_p1)
}
  0x20   :  { %30 = dma.hbm_to_vmem [thread:$0]  %s218_s1, 256, %s28_s15, [#allocation5]  }
  0x21   :  { %144 = dma.done.wait [#allocation3], 256  }
  0x22   :  { %145 = vsyncadd [#allocation3], 4294967040 }
  0x23   :  { %146 = dma.done.wait [#allocation5], 256  }
  0x24   :  { %147 = vsyncadd [#allocation5], 4294967040  ;;  %vm41_vm0 = vcmask 7168   ;;  %v150_v0 = vmov 0.0   ;;  %v44_v1 = vld [vmem:[#allocation2] sm:$0xff]  ;;  %v45_v2 = vld [vmem:[#allocation2 + $0x8] sm:$0xff] }
  0x25   :  { %42 = vst.msk [vmem:[%s219_s2] sm:$0xff] %vm41_vm0, %v150_v0  ;;  %43 = vst.msk [vmem:[%s220_s3] sm:$0xff] %vm41_vm0, %v150_v0  ;;  %v87_v3 = vmul.f32 -1.442695, %v44_v1  ;;  %v88_v4 = vmul.f32 -1.442695, %v45_v2 }
  0x26   :  { %v46_v9 = vld [vmem:[#allocation4] sm:$0xff]  ;;  %v47_v10 = vld [vmem:[#allocation4 + $0x8] sm:$0xff] }
  0x27   :  { %92 = vpow2.f32 %v87_v3 }
  0x28   :  { %94 = vpow2.f32 %v88_v4 }
  0x2c   :  { %v60_v19 = vld [vmem:[%s219_s2] sm:$0xff] }
  0x2d   :  { %v69_v22 = vld [vmem:[%s220_s3] sm:$0xff] }
  0x31   :  { %v93_v5 = vpop.eup %92 }
  0x32   :  { %v95_v6 = vpop.eup %94  ;;  %v54_v7 = vadd.f32 1.0, %v93_v5 }
  0x33   :  { %v55_v8 = vadd.f32 1.0, %v95_v6 }
  0x34   :  { %96 = vrcp.f32 %v54_v7 }
  0x35   :  { %98 = vrcp.f32 %v55_v8 }
  0x3e   :  { %v97_v11 = vpop.eup %96 }
  0x3f   :  { %v99_v12 = vpop.eup %98  ;;  %v61_v13 = vmul.f32 %v97_v11, %v46_v9  ;;  %v70_v15 = vadd.f32 %v97_v11, %v46_v9 }
  0x40   :  { %v62_v14 = vmul.f32 %v99_v12, %v47_v10  ;;  %v71_v16 = vadd.f32 %v99_v12, %v47_v10 }
  0x42   :  { %v63_v17 = vadd.f32 %v62_v14, %v61_v13  ;;  %v72_v18 = vadd.f32 %v71_v16, %v70_v15 }
  0x44   :  { %64 = vadd.xlane.f32.xlu0 %v63_v17 }
  0x48   :  { %73 = vadd.xlane.f32.xlu0 %v72_v18 }
  0xd1   :  { %v65_v20 = vpop.xlane.xlu0 %64 }
  0xd2   :  { %v66_v21 = vadd.f32 %v65_v20, %v60_v19 }
  0xd4   :  { %68 = vst.msk [vmem:[%s219_s2] sm:$0xff] %vm41_vm0, %v66_v21 }
  0xd5   :  { %v74_v23 = vpop.xlane.xlu0 %73 }
  0xd6   :  { %v75_v24 = vadd.f32 %v74_v23, %v69_v22 }
  0xd8   :  { %76 = vst.msk [vmem:[%s220_s3] sm:$0xff] %vm41_vm0, %v75_v24 }
  0xd9   :  { %85 = vsyncpa [#allocation3], 1 }
  0xda   :  { %86 = vsyncpa [#allocation5], 1 }

</bundles_post_ra>
